<compile_context>
chip_gen: v6e
topology: v6e:2x2x1
jax: 0.10.0
libtpu: 0.0.40
codegen_flags: <defaults>
</compile_context>

<pallas_src>
import numpy as np
import jax
import jax.numpy as jnp
from jax.experimental import pallas as pl
from jax.experimental.pallas import tpu as pltpu


# ----------------------------------------------------------------------------
# Kernels
# ----------------------------------------------------------------------------
def _make_kernel_cn(s, n, c, tn):
    """Lane-dense path for small C. x tile: (C, TN); per-sample losses out: (1, TN)."""
    s = float(s)

    def kernel(x_ref, t_ref, m_ref, o_ref):
        i = pl.program_id(0)
        x = x_ref[...].astype(jnp.float32)          # (C, TN)
        t = t_ref[...]                              # (1, TN) int32
        m = m_ref[...].astype(jnp.float32)          # (C, 1)

        cls = jax.lax.broadcasted_iota(jnp.int32, (c, tn), 0)
        one_hot = (cls == t).astype(jnp.float32)    # (C, TN)

        # Fused true-class gathers (one pass each over the tile).
        x_true = jnp.sum(one_hot * x, axis=0, keepdims=True)    # (1, TN)
        batch_m = jnp.sum(one_hot * m, axis=0, keepdims=True)   # (1, TN)

        # z = s * (x - one_hot * batch_m) ; cross entropy per sample (column).
        z = s * (x - one_hot * batch_m)             # (C, TN)
        zmax = jnp.max(z, axis=0, keepdims=True)    # (1, TN)
        lse = zmax + jnp.log(jnp.sum(jnp.exp(z - zmax), axis=0, keepdims=True))
        per_sample = lse - s * (x_true - batch_m)   # (1, TN)

        # Mask padded columns of a ragged tail tile.
        col = jax.lax.broadcasted_iota(jnp.int32, (1, tn), 1)
        valid = (i * tn + col) < n
        o_ref[...] = jnp.where(valid, per_sample, 0.0)

    return kernel


def _make_kernel_nc(s, n, c, tn):
    """(N, C) path for wide C. x tile: (TN, C); partial-sum out row: (1, 128)."""
    s = float(s)

    def kernel(x_ref, t_ref, m_ref, o_ref):
        i = pl.program_id(0)
        x = x_ref[...].astype(jnp.float32)          # (TN, C)
        t = t_ref[...]                              # (TN, 1) int32
        m = m_ref[...].astype(jnp.float32)          # (1, C)

        cls = jax.lax.broadcasted_iota(jnp.int32, (tn, c), 1)
        one_hot = (cls == t).astype(jnp.float32)    # (TN, C)

        x_true = jnp.sum(one_hot * x, axis=1, keepdims=True)    # (TN, 1)
        batch_m = jnp.sum(one_hot * m, axis=1, keepdims=True)   # (TN, 1)

        z = s * (x - one_hot * batch_m)             # (TN, C)
        zmax = jnp.max(z, axis=1, keepdims=True)
        lse = zmax + jnp.log(jnp.sum(jnp.exp(z - zmax), axis=1, keepdims=True))
        per_sample = lse - s * (x_true - batch_m)   # (TN, 1)

        # Mask padded rows of a ragged tail tile, then reduce to a partial sum.
        row = jax.lax.broadcasted_iota(jnp.int32, (tn, 1), 0)
        valid = (i * tn + row) < n
        partial = jnp.sum(jnp.where(valid, per_sample, 0.0))
        # Lane-dense (1, 128) store per tile; wrapper reads lane 0.
        o_ref[...] = jnp.full((1, 128), partial, dtype=jnp.float32)

    return kernel


# ----------------------------------------------------------------------------
# Wrapper
# ----------------------------------------------------------------------------
def ldam_loss(x, target, m_list, s=30.0, block_n=None):
    """x: (N, C) float logits, target: (N,) int, m_list: (C,) float. Returns scalar."""
    n, c = x.shape
    target = target.astype(jnp.int32)
    m_list = m_list.astype(jnp.float32)

    itemsize = jnp.dtype(x.dtype).itemsize
    cost = pl.CostEstimate(
        flops=int(10 * n * c),
        transcendentals=int(n * c + n),
        bytes_accessed=int(n * c * itemsize + n * 4 + c * 4 + n * 4),
    )
    cparams = pltpu.CompilerParams(dimension_semantics=("parallel",))

    if c < 128:
        # --- lane-dense (C, N) layout: batch on lanes, classes on sublanes ----
        if block_n is None:
            block_n = 2048
        if n <= block_n:
            tn = n                      # single tile == full dims (always legal)
        else:
            tn = max(128, (block_n // 128) * 128)
        grid_n = pl.cdiv(n, tn)

        xt = jnp.transpose(x)           # (C, N)  layout plumbing in the wrapper
        t2d = target.reshape(1, n)      # (1, N)
        m2d = m_list.reshape(c, 1)      # (C, 1)

        out = pl.pallas_call(
            _make_kernel_cn(s, n, c, tn),
            out_shape=jax.ShapeDtypeStruct((1, n), jnp.float32),
            grid=(grid_n,),
            in_specs=[
                pl.BlockSpec((c, tn), lambda i: (0, i)),
                pl.BlockSpec((1, tn), lambda i: (0, i)),
                pl.BlockSpec((c, 1), lambda i: (0, 0)),
            ],
            out_specs=pl.BlockSpec((1, tn), lambda i: (0, i)),
            compiler_params=cparams,
            cost_estimate=cost,
        )(xt, t2d, m2d)
        return jnp.sum(out) / n

    # --- wide-C (N, C) layout: classes on lanes, batch-row tiles ---------------
    if block_n is None:
        block_n = 256                   # keeps double-buffered x tile modest (v7x-safe)
    if n <= block_n:
        tn = n                          # single tile == full dims (always legal)
    else:
        tn = max(8, (block_n // 8) * 8)
    grid_n = pl.cdiv(n, tn)

    t2d = target.reshape(n, 1)          # (N, 1)
    m2d = m_list.reshape(1, c)          # (1, C)

    out = pl.pallas_call(
        _make_kernel_nc(s, n, c, tn),
        out_shape=jax.ShapeDtypeStruct((grid_n, 128), jnp.float32),
        grid=(grid_n,),
        in_specs=[
            pl.BlockSpec((tn, c), lambda i: (i, 0)),
            pl.BlockSpec((tn, 1), lambda i: (i, 0)),
            pl.BlockSpec((1, c), lambda i: (0, 0)),
        ],
        out_specs=pl.BlockSpec((1, 128), lambda i: (i, 0)),
        compiler_params=cparams,
        cost_estimate=cost,
    )(x, t2d, m2d)
    return jnp.sum(out[:, 0]) / n


# ----------------------------------------------------------------------------
# Pure-JAX reference (mirrors the PyTorch forward)
# ----------------------------------------------------------------------------
def ldam_loss_ref(x, target, m_list, s=30.0):
    n, c = x.shape
    one_hot = jax.nn.one_hot(target, c, dtype=jnp.float32)
    batch_m = one_hot @ m_list.reshape(c, 1)
    out = jnp.where(one_hot > 0, x.astype(jnp.float32) - batch_m, x.astype(jnp.float32))
    z = s * out
    logp = jax.nn.log_softmax(z, axis=1)
    return -jnp.mean(jnp.sum(one_hot * logp, axis=1))


if __name__ == "__main__":
    max_m, s = 0.5, 30.0
    key = jax.random.PRNGKey(0)
    kx, kt, kx2, kt2, kx3, kt3 = jax.random.split(key, 6)

    # ---- Case 1: module-sized small shapes (C=16 < 128 -> lane-dense path) ----
    num_classes, batch = 16, 8
    cls_num_list = np.array([100, 80, 64, 50, 40, 32, 25, 20,
                             16, 12, 10, 8, 6, 5, 4, 3], dtype=np.float64)
    m_np = 1.0 / np.sqrt(np.sqrt(cls_num_list))
    m_np = m_np * (max_m / np.max(m_np))
    m_list = jnp.asarray(m_np, dtype=jnp.float32)

    x = jax.random.normal(kx, (batch, num_classes), dtype=jnp.float32)
    target = jax.random.randint(kt, (batch,), 0, num_classes, dtype=jnp.int32)
    loss = jax.block_until_ready(ldam_loss(x, target, m_list, s=s))
    ref = ldam_loss_ref(x, target, m_list, s=s)
    assert jnp.allclose(loss, ref, rtol=1e-4, atol=1e-4), (loss, ref)

    # ---- Case 2: lane-dense path with batch tiling + ragged (masked) tail -----
    n2 = 300
    x2 = jax.random.normal(kx2, (n2, num_classes), dtype=jnp.float32)
    t2 = jax.random.randint(kt2, (n2,), 0, num_classes, dtype=jnp.int32)
    loss2 = jax.block_until_ready(ldam_loss(x2, t2, m_list, s=s, block_n=128))
    ref2 = ldam_loss_ref(x2, t2, m_list, s=s)
    assert jnp.allclose(loss2, ref2, rtol=1e-4, atol=1e-4), (loss2, ref2)

    # ---- Case 3: wide-C path ((N, C) layout) with tiling + ragged tail --------
    c3, n3 = 128, 24
    cls3 = np.linspace(100.0, 3.0, c3)
    m3 = 1.0 / np.sqrt(np.sqrt(cls3))
    m3 = jnp.asarray(m3 * (max_m / np.max(m3)), dtype=jnp.float32)
    x3 = jax.random.normal(kx3, (n3, c3), dtype=jnp.float32)
    t3 = jax.random.randint(kt3, (n3,), 0, c3, dtype=jnp.int32)
    loss3 = jax.block_until_ready(ldam_loss(x3, t3, m3, s=s, block_n=16))
    ref3 = ldam_loss_ref(x3, t3, m3, s=s)
    assert jnp.allclose(loss3, ref3, rtol=1e-4, atol=1e-4), (loss3, ref3)

    print("KERNEL_OK")
</pallas_src>

<mosaic_0001>
module attributes {stable_mosaic.version = 11 : i64} {
  func.func @kernel(%arg0: i32, %arg1: memref<16x8xf32, #tpu.memory_space<vmem>>, %arg2: memref<1x8xi32, #tpu.memory_space<vmem>>, %arg3: memref<16x1xf32, #tpu.memory_space<vmem>>, %arg4: memref<1x8xf32, #tpu.memory_space<vmem>>) attributes {dimension_semantics = [#tpu.dimension_semantics<parallel>], iteration_bounds = array<i64: 1>, scalar_prefetch = 0 : i64, scratch_operands = 0 : i64, tpu.core_type = #tpu.core_type<tc>, window_params = [{transform_indices = @transform_0, window_bounds = array<i64: 16, 8>}, {transform_indices = @transform_1, window_bounds = array<i64: 1, 8>}, {pipeline_mode = #tpu.pipeline_mode<synchronous>, transform_indices = @transform_2, window_bounds = array<i64: 16, 1>}, {transform_indices = @transform_3, window_bounds = array<i64: 1, 8>}]} {
    %c0 = arith.constant 0 : index
    %c0_0 = arith.constant 0 : index
    %0 = vector.load %arg1[%c0, %c0_0] : memref<16x8xf32, #tpu.memory_space<vmem>>, vector<16x8xf32>
    %c0_1 = arith.constant 0 : index
    %c0_2 = arith.constant 0 : index
    %1 = vector.load %arg2[%c0_1, %c0_2] : memref<1x8xi32, #tpu.memory_space<vmem>>, vector<1x8xi32>
    %c0_3 = arith.constant 0 : index
    %c0_4 = arith.constant 0 : index
    %2 = vector.load %arg3[%c0_3, %c0_4] : memref<16x1xf32, #tpu.memory_space<vmem>>, vector<16x1xf32>
    %3 = tpu.iota {dimensions = array<i32: 0>} : vector<16x8xi32>
    %4 = vector.broadcast %1 : vector<1x8xi32> to vector<16x8xi32>
    %5 = arith.cmpi eq, %3, %4 : vector<16x8xi32>
    %6 = arith.extui %5 : vector<16x8xi1> to vector<16x8xi32>
    %7 = arith.sitofp %6 : vector<16x8xi32> to vector<16x8xf32>
    %8 = arith.mulf %7, %0 : vector<16x8xf32>
    %cst = arith.constant dense<0.000000e+00> : vector<8xf32>
    %9 = vector.multi_reduction <add>, %8, %cst [0] : vector<16x8xf32> to vector<8xf32>
    %10 = vector.shape_cast %9 : vector<8xf32> to vector<1x8xf32>
    %11 = vector.broadcast %2 : vector<16x1xf32> to vector<16x8xf32>
    %12 = arith.mulf %7, %11 : vector<16x8xf32>
    %cst_5 = arith.constant dense<0.000000e+00> : vector<8xf32>
    %13 = vector.multi_reduction <add>, %12, %cst_5 [0] : vector<16x8xf32> to vector<8xf32>
    %14 = vector.shape_cast %13 : vector<8xf32> to vector<1x8xf32>
    %15 = vector.broadcast %14 : vector<1x8xf32> to vector<16x8xf32>
    %16 = arith.mulf %7, %15 : vector<16x8xf32>
    %17 = arith.subf %0, %16 : vector<16x8xf32>
    %cst_6 = arith.constant 3.000000e+01 : f32
    %18 = vector.broadcast %cst_6 : f32 to vector<16x8xf32>
    %19 = arith.mulf %18, %17 : vector<16x8xf32>
    %cst_7 = arith.constant dense<0xFF800000> : vector<8xf32>
    %20 = vector.multi_reduction <maximumf>, %19, %cst_7 [0] : vector<16x8xf32> to vector<8xf32>
    %21 = vector.shape_cast %20 : vector<8xf32> to vector<1x8xf32>
    %22 = vector.broadcast %21 : vector<1x8xf32> to vector<16x8xf32>
    %23 = arith.subf %19, %22 : vector<16x8xf32>
    %24 = math.exp %23 : vector<16x8xf32>
    %cst_8 = arith.constant dense<0.000000e+00> : vector<8xf32>
    %25 = vector.multi_reduction <add>, %24, %cst_8 [0] : vector<16x8xf32> to vector<8xf32>
    %26 = vector.shape_cast %25 : vector<8xf32> to vector<1x8xf32>
    %27 = math.log %26 : vector<1x8xf32>
    %28 = arith.addf %21, %27 : vector<1x8xf32>
    %29 = arith.subf %10, %14 : vector<1x8xf32>
    %cst_9 = arith.constant 3.000000e+01 : f32
    %30 = vector.broadcast %cst_9 : f32 to vector<1x8xf32>
    %31 = arith.mulf %30, %29 : vector<1x8xf32>
    %32 = arith.subf %28, %31 : vector<1x8xf32>
    %33 = tpu.iota {dimensions = array<i32: 1>} : vector<1x8xi32>
    %c8_i32 = arith.constant 8 : i32
    %34 = arith.muli %arg0, %c8_i32 : i32
    %35 = vector.broadcast %34 : i32 to vector<1x8xi32>
    %36 = arith.addi %35, %33 : vector<1x8xi32>
    %c8_i32_10 = arith.constant 8 : i32
    %37 = vector.broadcast %c8_i32_10 : i32 to vector<1x8xi32>
    %38 = arith.cmpi slt, %36, %37 : vector<1x8xi32>
    %cst_11 = arith.constant 0.000000e+00 : f32
    %39 = vector.broadcast %cst_11 : f32 to vector<1x8xf32>
    %40 = arith.select %38, %32, %39 : vector<1x8xi1>, vector<1x8xf32>
    %c0_12 = arith.constant 0 : index
    %c0_13 = arith.constant 0 : index
    %41 = vector.load %arg4[%c0_12, %c0_13] : memref<1x8xf32, #tpu.memory_space<vmem>>, vector<1x8xf32>
    tpu.vector_store %arg4[%c0_12, %c0_13], %40 {strides = array<i32>} : memref<1x8xf32, #tpu.memory_space<vmem>>, vector<1x8xf32>,
    return
  }
  func.func @transform_0(%arg0: i32) -> (i32, i32) {
    %c0_i32 = arith.constant 0 : i32
    %c0_i32_0 = arith.constant 0 : i32
    return %c0_i32, %arg0 : i32, i32
  }
  func.func @transform_1(%arg0: i32) -> (i32, i32) {
    %c0_i32 = arith.constant 0 : i32
    %c0_i32_0 = arith.constant 0 : i32
    return %c0_i32, %arg0 : i32, i32
  }
  func.func @transform_2(%arg0: i32) -> (i32, i32) {
    %c0_i32 = arith.constant 0 : i32
    %c0_i32_0 = arith.constant 0 : i32
    %c0_i32_1 = arith.constant 0 : i32
    return %c0_i32, %c0_i32_0 : i32, i32
  }
  func.func @transform_3(%arg0: i32) -> (i32, i32) {
    %c0_i32 = arith.constant 0 : i32
    %c0_i32_0 = arith.constant 0 : i32
    return %c0_i32, %arg0 : i32, i32
  }
}

</mosaic_0001>

<bundles_post_ra>
// kernel: tpu_custom_call.1
= control target key start
LH: loop header
LB: loop body
LE: loop exit
PB: predicated region body
PF: predicated region fallthrough
CT: control target
= control target key end

     0   :  { %v160_v1 = vmov 0   ;;  %s211_s0 = inlined_call_operand.vmem [shape: f32[16,8], index: 0, kind: input, shape index: {}]   ;;  %s212_s1 = inlined_call_operand.vmem [shape: s32[1,8], index: 1, kind: input, shape index: {}]   ;;  %s213_s2 = inlined_call_operand.vmem [shape: f32[16,1], index: 2, kind: input, shape index: {}]   ;;  %s214_s3 = inlined_call_operand.hbm [shape: f32[1,8], index: 3, kind: output, shape index: {}]  }
   0x1   :  { %v18_v0 = vld [vmem:[%s213_s2] sm:$0xff]  ;;  %131 = vset.pattern.permute.xlu0 %v160_v1 }
   0x2   :  { %8 = vsyncpa [#allocation3], 0  ;;  %47 = vperm.xlu0 %131, %v18_v0   ;;  %v19_v2 = vld [vmem:[%s213_s2 + $0x8] sm:$0xff]  ;;  %v20_v3 = vlaneseq  ;;  %v125_v5 = vld [vmem:[%s212_s1] ss:$0 sm:$0xff]  ;;  %v161_v8 = vmov 0.0  }
   0x3   :  { %vm35_vm2 = vcmask 64512   ;;  %v15_v25 = vld [vmem:[%s211_s0] sm:$0xff]  ;;  %v16_v26 = vld [vmem:[%s211_s0 + $0x8] sm:$0xff]  ;;  %s162_s0 = smov [#allocation2]   ;;  %vm109_vm4 = vcmask 57344  }
   0x4   :  { %v21_v4 = vshrl.u32 %v20_v3, 7  ;;  %s117_s20 = sshll.u32 %s162_s0, 4  ;;  %s118_s20 = int_to_ptr.vmem [resolvable:$true] %s117_s20 }
   0x5   :  { %s138_s21 = scalar_lea.vmem %s118_s20, 16  ;;  %s142_s22 = scalar_lea.vmem %s118_s20, 32 }
   0x6   :  { %52 = vperm.xlu0 %131, %v19_v2   ;;  %v22_v6 = vadd.s32 8, %v21_v4  ;;  %vm27_vm0 = vcmp.eq.s32.totalorder %v21_v4, %v125_v5  ;;  %p139_p0 = scmp.ne.s32.totalorder %s118_s20, %s138_s21  ;;  %p143_p1 = scmp.lt.s32.totalorder %s118_s20, %s118_s20 }
   0x7   :  { %v126_v9 = vsel %vm27_vm0, 1.0, %v161_v8  ;;  %p144_p2 = scmp.lt.s32.totalorder %s142_s22, %s138_s21 }
   0x8   :  { %vm28_vm1 = vcmp.eq.s32.totalorder %v22_v6, %v125_v5  ;;  %v33_v44 = vmul.f32 %v126_v9, %v15_v25  ;;  %v103_v5 = vand.u32 127, %v20_v3 }
   0x9   :  { %v127_v10 = vsel %vm28_vm1, 1.0, %v161_v8  ;;  %p145_p3 = por %p144_p2, %p143_p1 }
   0xa   :  { %v34_v45 = vmul.f32 %v127_v10, %v16_v26  ;;  %v36_v46 = vsel %vm35_vm2, %v33_v44, 0.0  ;;  %vm107_vm3 = vcmp.lt.s32.totalorder %v103_v5, 8 }
   0xb   :  { %p146_p4 = pnand %p145_p3, %p139_p0 }
   0xc   :  { %v37_v47 = vsel %vm35_vm2, %v34_v45, 0.0 }
   0xd   :  { %v38_v50 = vadd.f32 %v37_v47, %v36_v46 }
   0xf   :  { %v39_v54 = vrot.slane %v38_v50, 4 }
  0x11   :  { %v40_v57 = vadd.f32 %v39_v54, %v38_v50 }
  0x13   :  { %v41_v60 = vrot.slane %v40_v57, 2 }
  0x15   :  { %v42_v63 = vadd.f32 %v41_v60, %v40_v57 }
  0x17   :  { %v43_v0 = vrot.slane %v42_v63, 1 }
  0x19   :  { %v44_v1 = vadd.f32 %v43_v0, %v42_v63 }
  0x7d   :  { %v48_v7 = vpop.permute.xlu0 %47 }
  0x7e   :  { %v55_v11 = vmul.f32 %v126_v9, %v48_v7 }
  0x80   :  { %v57_v14 = vsel %vm35_vm2, %v55_v11, 0.0 }
  0x81   :  { %v53_v12 = vpop.permute.xlu0 %52 }
  0x82   :  { %v56_v13 = vmul.f32 %v127_v10, %v53_v12 }
  0x84   :  { %v58_v15 = vsel %vm35_vm2, %v56_v13, 0.0 }
  0x85   :  { %v59_v16 = vadd.f32 %v58_v15, %v57_v14 }
  0x87   :  { %v60_v17 = vrot.slane %v59_v16, 4 }
  0x89   :  { %v61_v18 = vadd.f32 %v60_v17, %v59_v16 }
  0x8b   :  { %v62_v19 = vrot.slane %v61_v18, 2 }
  0x8d   :  { %v63_v20 = vadd.f32 %v62_v19, %v61_v18 }
  0x8f   :  { %v64_v21 = vrot.slane %v63_v20, 1 }
  0x91   :  { %v65_v22 = vadd.f32 %v64_v21, %v63_v20 }
  0x93   :  { %v66_v23 = vmul.f32 %v126_v9, %v65_v22  ;;  %v67_v24 = vmul.f32 %v127_v10, %v65_v22  ;;  %v99_v2 = vsub.f32 %v44_v1, %v65_v22 }
  0x95   :  { %v68_v27 = vsub.f32 %v15_v25, %v66_v23  ;;  %v69_v28 = vsub.f32 %v16_v26, %v67_v24  ;;  %v100_v8 = vmul.f32 30.0, %v99_v2 }
  0x97   :  { %v70_v29 = vmul.f32 30.0, %v68_v27  ;;  %v71_v30 = vmul.f32 30.0, %v69_v28 }
  0x99   :  { %v72_v31 = vsel %vm35_vm2, %v70_v29, -inf  ;;  %v73_v32 = vsel %vm35_vm2, %v71_v30, -inf }
  0x9a   :  { %v74_v33 = vmax.f32 %v72_v31, %v73_v32 }
  0x9c   :  { %v75_v34 = vrot.slane %v74_v33, 4 }
  0x9e   :  { %v76_v35 = vmax.f32 %v74_v33, %v75_v34 }
  0xa0   :  { %v77_v36 = vrot.slane %v76_v35, 2 }
  0xa2   :  { %v78_v37 = vmax.f32 %v76_v35, %v77_v36 }
  0xa4   :  { %v79_v38 = vrot.slane %v78_v37, 1 }
  0xa6   :  { %v80_v39 = vmax.f32 %v78_v37, %v79_v38 }
  0xa8   :  { %v81_v40 = vsub.f32 %v70_v29, %v80_v39  ;;  %v82_v41 = vsub.f32 %v71_v30, %v80_v39 }
  0xaa   :  { %v83_v42 = vmul.f32 1.442695, %v81_v40  ;;  %v85_v43 = vmul.f32 1.442695, %v82_v41 }
  0xac   :  { %132 = vpow2.f32 %v83_v42 }
  0xad   :  { %134 = vpow2.f32 %v85_v43 }
  0xb9   :  { %v133_v48 = vpop.eup %132 }
  0xba   :  { %v135_v49 = vpop.eup %134  ;;  %v87_v51 = vsel %vm35_vm2, %v133_v48, 0.0 }
  0xbb   :  { %v88_v52 = vsel %vm35_vm2, %v135_v49, 0.0 }
  0xbc   :  { %v89_v53 = vadd.f32 %v88_v52, %v87_v51 }
  0xbe   :  { %v90_v55 = vrot.slane %v89_v53, 4 }
  0xc0   :  { %v91_v56 = vadd.f32 %v90_v55, %v89_v53 }
  0xc2   :  { %v92_v58 = vrot.slane %v91_v56, 2 }
  0xc4   :  { %v93_v59 = vadd.f32 %v92_v58, %v91_v56 }
  0xc6   :  { %v94_v61 = vrot.slane %v93_v59, 1 }
  0xc8   :  { %v95_v62 = vadd.f32 %v94_v61, %v93_v59 }
  0xca   :  { %136 = vlog2.f32 %v95_v62 }
  0xd7   :  { %v137_v4 = vpop.eup %136 }
  0xd8   :  { %v97_v6 = vmul.f32 0.6931472, %v137_v4 }
  0xda   :  { %v98_v7 = vadd.f32 %v97_v6, %v80_v39 }
  0xdc   :  { %v101_v9 = vsub.f32 %v98_v7, %v100_v8 }
  0xde   :  { %v108_v10 = vsel %vm107_vm3, %v101_v9, 0.0 }
  0xdf   :  { %110 = vst.msk [vmem:[#allocation2] sm:$0x1] %vm109_vm4, %v108_v10 }
  0xe0   :  { %149 = shalt.err (!%p146_p4)
}
  0xe1   :  { %120 = dma.vmem_to_hbm [thread:$0]  %s118_s20, 16, %s214_s3, [#allocation3]  }
  0xe2   :  { %158 = dma.done.wait [#allocation3], 16  }
  0xe3   :  { %159 = vsyncadd [#allocation3], 4294967280 }
  0xe4   :  { %124 = vsyncpa [#allocation3], 1 }

</bundles_post_ra>
